<compile_context>
chip_gen: v6e
topology: v6e:2x2x1
jax: 0.10.0
libtpu: 0.0.40
codegen_flags: <defaults>
</compile_context>

<pallas_src>
import jax
import jax.numpy as jnp
from jax import lax
from jax.experimental import pallas as pl
from jax.experimental.pallas import tpu as pltpu


# ----------------------------- Pallas kernels ------------------------------ #

def _conv_patch_kernel(p_ref, w_ref, b_ref, o_ref):
    # p_ref: (num_patches, K)   w_ref: (K, n_cols)   b_ref: (1, n_cols)
    o_ref[...] = (
        jnp.dot(p_ref[...], w_ref[...],
                preferred_element_type=jnp.float32,
                precision=lax.Precision.HIGHEST)
        + b_ref[...]
    )


def _assemble_kernel(sel_ref, x_ref, mpe_ref, o_ref):
    # sel_ref: (Np1, Sx)   exact {0,1} row-selection matrix (one-hot or zero rows)
    # x_ref  : (Sx, B*D)   kept-token embeddings, batch-major along lanes
    # mpe_ref: (Np1, B*D)  is_mask[p] * patch_embeeding, tiled over batch
    # o_ref  : (Np1, B*D)
    # One MXU matmul gathers the kept rows (exact: multipliers are 0/1 at
    # HIGHEST precision); masked-patch rows have zero sel rows, so adding the
    # precomputed mask*pe slab never overlaps a gathered value.
    gathered = jnp.dot(sel_ref[...], x_ref[...],
                       preferred_element_type=jnp.float32,
                       precision=lax.Precision.HIGHEST)
    o_ref[...] = (gathered + mpe_ref[...]).astype(o_ref.dtype)


# ------------------------------- wrappers ---------------------------------- #

def conv_patch_embed_cols(raw_img, weight, bias, patch_size, n_cols):
    """First n_cols output channels of Conv2d(kernel=stride=patch) on a single
    NCHW image via im2col + one Pallas MXU matmul. Returns ((h*w, n_cols), h, w)."""
    C, H, W = raw_img.shape
    P = patch_size
    h, w = H // P, W // P
    E = weight.shape[0]
    K = C * P * P
    # im2col: (h*w, C*P*P); contraction order matches Conv2d's OIHW weight flatten
    patches = raw_img.reshape(C, h, P, w, P).transpose(1, 3, 0, 2, 4).reshape(h * w, K)
    wt = weight.reshape(E, K)[:n_cols].T          # (K, n_cols) — only needed channels
    b2 = bias[:n_cols].reshape(1, n_cols)

    out = pl.pallas_call(
        _conv_patch_kernel,
        out_shape=jax.ShapeDtypeStruct((h * w, n_cols), jnp.float32),
        grid=(1,),
        in_specs=[
            pl.BlockSpec((h * w, K), lambda i: (0, 0)),
            pl.BlockSpec((K, n_cols), lambda i: (0, 0)),
            pl.BlockSpec((1, n_cols), lambda i: (0, 0)),
        ],
        out_specs=pl.BlockSpec((h * w, n_cols), lambda i: (0, 0)),
    )(patches, wt, b2)
    return out, h, w


@jax.jit
def assemble_decoder_embedding(x, sel, mask_pe):
    """out[b, p, :] = sum_s sel[p, s] * x[b, s, :] + mask_pe[p, :].

    sel rows are one-hot (kept token) or zero (masked / untouched position);
    mask_pe[p] is patch_embeeding for masked positions and 0 otherwise."""
    B, Sx, D = x.shape
    Np1 = sel.shape[0]
    # Lane-dense slabs: last dim B*D. The transposes/reshapes are tiny layout
    # plumbing fused under jit.
    x2d = jnp.transpose(x, (1, 0, 2)).reshape(Sx, B * D)   # col b*D+d = x[b,s,d]
    mpe = jnp.tile(mask_pe, (1, B))                        # col b*D+d = mask_pe[p,d]
    out2d = pl.pallas_call(
        _assemble_kernel,
        out_shape=jax.ShapeDtypeStruct((Np1, B * D), x.dtype),
        grid=(1,),
        in_specs=[
            pl.BlockSpec((Np1, Sx), lambda i: (0, 0)),
            pl.BlockSpec((Sx, B * D), lambda i: (0, 0)),
            pl.BlockSpec((Np1, B * D), lambda i: (0, 0)),
        ],
        out_specs=pl.BlockSpec((Np1, B * D), lambda i: (0, 0)),
        compiler_params=pltpu.CompilerParams(dimension_semantics=("arbitrary",)),
    )(sel, x2d, mpe)
    return out2d.reshape(Np1, B, D).transpose(1, 0, 2)      # (B, Np1, D)


class UnMaskEmbeedingSpaPallas:
    """JAX/Pallas port of UnMaskEmbeeding_spa (deterministic synthetic weights)."""

    def __init__(self, input_size, embed_dim, in_chans, patch_size, num_patches, key):
        self.in_chans = in_chans
        self.embed_dim = embed_dim
        self.patch_size = patch_size
        self.num_patches = num_patches
        # raw_inputs = ones(C, H, W) * 127/255  (constant gray image)
        self.raw_inputs = (jnp.ones((in_chans, input_size, input_size), jnp.float32)
                           * 127.0 / 255.0)
        # Conv2d(in_chans, embed_dim, kernel=patch, stride=patch) params,
        # deterministic init mimicking PyTorch uniform(-1/sqrt(fan_in), 1/sqrt(fan_in)).
        k1, k2 = jax.random.split(key)
        fan_in = in_chans * patch_size * patch_size
        bound = 1.0 / (fan_in ** 0.5)
        self.weight = jax.random.uniform(
            k1, (embed_dim, in_chans, patch_size, patch_size),
            jnp.float32, -bound, bound)
        self.bias = jax.random.uniform(k2, (embed_dim,), jnp.float32, -bound, bound)

        # ---- hoisted constant conv path (computed once, cached) ----
        # raw_inputs / weight / bias never change after init, so the Conv2d and
        # the `.view(b,-1,c)[0,0,:]` gather are pure constants of the module.
        # NOTE: if raw_inputs ever becomes input-dependent, move this back into
        # __call__ (the j%hw / j//hw gather below stays valid either way).
        hw = num_patches
        n_cols = (embed_dim - 1) // hw + 1        # only the channels actually read
        conv_cols, h, w = conv_patch_embed_cols(
            self.raw_inputs, self.weight, self.bias, patch_size, n_cols)
        assert h * w == hw
        # torch: proj(raw).view(b, -1, c)[0, 0, :] == first embed_dim elems of the
        # flat NCHW buffer == conv[patch = j % hw, channel = j // hw]
        j = jnp.arange(embed_dim)
        pe = conv_cols[j % hw, j // hw]           # (embed_dim,)
        self.patch_embeeding_row = pe.reshape(1, embed_dim).astype(jnp.float32)

        self._table_cache = {}

    def _get_tables(self, sample_index, mask_index):
        """Cached (sel, mask_pe) for a given (sample_index, mask_index) config."""
        key_t = (tuple(sample_index), tuple(mask_index))
        hit = self._table_cache.get(key_t)
        if hit is not None:
            return hit
        np1 = 1 + self.num_patches
        sx = 1 + len(sample_index)
        # torch assignment order: sample positions first, mask second -> mask wins;
        # duplicate indices -> last write wins (handled by overwriting src[p]).
        src = [-1] * np1
        for s_i, p in enumerate([0] + list(sample_index)):
            src[p] = s_i
        for p in mask_index:
            src[p] = -2
        sel_rows = []
        is_mask = []
        for p in range(np1):
            row = [0.0] * sx
            if src[p] >= 0:
                row[src[p]] = 1.0
            sel_rows.append(row)
            is_mask.append(1.0 if src[p] == -2 else 0.0)
        sel = jnp.asarray(sel_rows, jnp.float32)                              # (Np1, Sx)
        mask_pe = (jnp.asarray(is_mask, jnp.float32)[:, None]
                   * self.patch_embeeding_row)                               # (Np1, D)
        tables = (sel, mask_pe)
        self._table_cache[key_t] = tables
        return tables

    def __call__(self, x, sample_index, mask_index):
        # x: (b, 1 + len(sample_index), embed_dim)
        sel, mask_pe = self._get_tables(sample_index, mask_index)
        return assemble_decoder_embedding(x, sel, mask_pe)


# ------------------------------ reference ---------------------------------- #

def reference_forward(x, sample_index, mask_index, raw, weight, bias,
                      patch_size, num_patches, embed_dim):
    emb = lax.conv_general_dilated(
        raw[None], weight, (patch_size, patch_size), "VALID",
        dimension_numbers=("NCHW", "OIHW", "NCHW"),
        precision=lax.Precision.HIGHEST)
    emb = emb + bias[None, :, None, None]
    b_, c, h, w = emb.shape
    pe = emb.reshape(b_, -1, c)[0, 0, :]                 # same memory trick as torch .view
    dec = jnp.zeros((x.shape[0], 1 + num_patches, embed_dim), jnp.float32)
    dec = dec.at[:, jnp.array([0] + list(sample_index)), :].set(x)
    dec = dec.at[:, jnp.array(mask_index), :].set(pe)
    return dec


# --------------------------------- main ------------------------------------ #

if __name__ == "__main__":
    key = jax.random.PRNGKey(0)
    k_params, k_x = jax.random.split(key)

    input_size = 16
    patch_size = 4
    in_chans = 3
    embed_dim = 32
    num_patches = (input_size // patch_size) ** 2            # 16

    sample_index = [2, 5, 7, 9, 11, 14, 16]                  # kept patch positions
    mask_index = [p for p in range(1, num_patches + 1) if p not in sample_index]

    batch = 2
    x = jax.random.normal(k_x, (batch, 1 + len(sample_index), embed_dim), jnp.float32)

    module = UnMaskEmbeedingSpaPallas(
        input_size, embed_dim, in_chans, patch_size, num_patches, k_params)

    out = module(x, sample_index, mask_index)
    out = jax.block_until_ready(out)

    # second call exercises the cached tables / cached patch_embeeding / jitted path
    out2 = jax.block_until_ready(module(x, sample_index, mask_index))

    ref = reference_forward(x, sample_index, mask_index, module.raw_inputs,
                            module.weight, module.bias, patch_size,
                            num_patches, embed_dim)
    assert out.shape == (batch, 1 + num_patches, embed_dim)
    assert jnp.allclose(out, ref, atol=1e-4, rtol=1e-4)
    assert jnp.allclose(out2, ref, atol=1e-4, rtol=1e-4)

    print("KERNEL_OK")
</pallas_src>

<mosaic_0001>
module attributes {stable_mosaic.version = 11 : i64} {
  func.func @_conv_patch_kernel(%arg0: i32, %arg1: memref<16x48xf32, #tpu.memory_space<vmem>>, %arg2: memref<48x2xf32, #tpu.memory_space<vmem>>, %arg3: memref<1x2xf32, #tpu.memory_space<vmem>>, %arg4: memref<16x2xf32, #tpu.memory_space<vmem>>) attributes {dimension_semantics = [#tpu.dimension_semantics<arbitrary>], iteration_bounds = array<i64: 1>, scalar_prefetch = 0 : i64, scratch_operands = 0 : i64, tpu.core_type = #tpu.core_type<tc>, window_params = [{pipeline_mode = #tpu.pipeline_mode<synchronous>, transform_indices = @transform_0, window_bounds = array<i64: 16, 48>}, {pipeline_mode = #tpu.pipeline_mode<synchronous>, transform_indices = @transform_1, window_bounds = array<i64: 48, 2>}, {pipeline_mode = #tpu.pipeline_mode<synchronous>, transform_indices = @transform_2, window_bounds = array<i64: 1, 2>}, {pipeline_mode = #tpu.pipeline_mode<synchronous>, transform_indices = @transform_3, window_bounds = array<i64: 16, 2>}]} {
    %c0 = arith.constant 0 : index
    %c0_0 = arith.constant 0 : index
    %0 = vector.load %arg1[%c0, %c0_0] : memref<16x48xf32, #tpu.memory_space<vmem>>, vector<16x48xf32>
    %c0_1 = arith.constant 0 : index
    %c0_2 = arith.constant 0 : index
    %1 = vector.load %arg2[%c0_1, %c0_2] : memref<48x2xf32, #tpu.memory_space<vmem>>, vector<48x2xf32>
    %cst = arith.constant dense<0.000000e+00> : vector<16x2xf32>
    %2 = tpu.matmul %0, %1, %cst {dimension_numbers = #tpu.dot_dimension_numbers<[1], [0], [0], [1], [0, 0, 1, 1], [], []>, precision = #tpu.contract_precision<fp32>} : vector<16x48xf32>, vector<48x2xf32>, vector<16x2xf32> -> vector<16x2xf32>
    %c0_3 = arith.constant 0 : index
    %c0_4 = arith.constant 0 : index
    %3 = vector.load %arg3[%c0_3, %c0_4] : memref<1x2xf32, #tpu.memory_space<vmem>>, vector<1x2xf32>
    %4 = vector.broadcast %3 : vector<1x2xf32> to vector<16x2xf32>
    %5 = arith.addf %2, %4 : vector<16x2xf32>
    %c0_5 = arith.constant 0 : index
    %c0_6 = arith.constant 0 : index
    %6 = vector.load %arg4[%c0_5, %c0_6] : memref<16x2xf32, #tpu.memory_space<vmem>>, vector<16x2xf32>
    tpu.vector_store %arg4[%c0_5, %c0_6], %5 {strides = array<i32>} : memref<16x2xf32, #tpu.memory_space<vmem>>, vector<16x2xf32>,
    return
  }
  func.func @transform_0(%arg0: i32) -> (i32, i32) {
    %c0_i32 = arith.constant 0 : i32
    %c0_i32_0 = arith.constant 0 : i32
    %c0_i32_1 = arith.constant 0 : i32
    return %c0_i32, %c0_i32_0 : i32, i32
  }
  func.func @transform_1(%arg0: i32) -> (i32, i32) {
    %c0_i32 = arith.constant 0 : i32
    %c0_i32_0 = arith.constant 0 : i32
    %c0_i32_1 = arith.constant 0 : i32
    return %c0_i32, %c0_i32_0 : i32, i32
  }
  func.func @transform_2(%arg0: i32) -> (i32, i32) {
    %c0_i32 = arith.constant 0 : i32
    %c0_i32_0 = arith.constant 0 : i32
    %c0_i32_1 = arith.constant 0 : i32
    return %c0_i32, %c0_i32_0 : i32, i32
  }
  func.func @transform_3(%arg0: i32) -> (i32, i32) {
    %c0_i32 = arith.constant 0 : i32
    %c0_i32_0 = arith.constant 0 : i32
    %c0_i32_1 = arith.constant 0 : i32
    return %c0_i32, %c0_i32_0 : i32, i32
  }
}

</mosaic_0001>

<bundles_post_ra>
// kernel: tpu_custom_call.1
= control target key start
LH: loop header
LB: loop body
LE: loop exit
PB: predicated region body
PF: predicated region fallthrough
CT: control target
= control target key end

     0   :  { %vm29_vm0 = vcmask 392192   ;;  %vm590_vm1 = vcmask 15360   ;;  %s911_s1 = inlined_call_operand.vmem [shape: f32[48,2], index: 1, kind: input, shape index: {}]   ;;  %s912_s0 = inlined_call_operand.vmem [shape: f32[16,48], index: 0, kind: input, shape index: {}]   ;;  %s913_s2 = inlined_call_operand.vmem [shape: f32[1,2], index: 2, kind: input, shape index: {}]   ;;  %s914_s3 = inlined_call_operand.vmem [shape: f32[16,2], index: 3, kind: output, shape index: {}]  }
   0x1   :  { %v21_v0 = vld [vmem:[%s911_s1 + $0x28] sm:$0xff]  ;;  %v20_v1 = vld [vmem:[%s911_s1 + $0x20] sm:$0xff]  ;;  %v19_v2 = vld [vmem:[%s911_s1 + $0x18] sm:$0xff] }
   0x2   :  { %v765_v3 = vand.u32 4294901760, %v21_v0  ;;  %v767_v4 = vand.u32 4294901760, %v20_v1  ;;  %v769_v5 = vand.u32 4294901760, %v19_v2  ;;  %v18_v6 = vld [vmem:[%s911_s1 + $0x10] sm:$0xff]  ;;  %v17_v7 = vld [vmem:[%s911_s1 + $0x8] sm:$0xff]  ;;  %v16_v8 = vld [vmem:[%s911_s1] sm:$0xff] }
   0x3   :  { %v780_v9 = vand.u32 4294901760, %v18_v6  ;;  %v782_v10 = vand.u32 4294901760, %v17_v7  ;;  %v784_v11 = vand.u32 4294901760, %v16_v8  ;;  %v14_v12 = vld [vmem:[%s912_s0] sm:$0xff]  ;;  %v15_v13 = vld [vmem:[%s912_s0 + $0x8] sm:$0xff] }
   0x4   :  { %646 = vmatprep.subr.mxu0 %v765_v3  ;;  %v149_v14 = vsub.f32 %v21_v0, %v765_v3  ;;  %v156_v15 = vsub.f32 %v20_v1, %v767_v4  ;;  %v31_v16 = vsel %vm29_vm0, %v14_v12, 0  ;;  %v34_v17 = vsel %vm29_vm0, %v15_v13, 0  ;;  %v597_v51 = vld [vmem:[%s913_s2] ss:$0 sm:$0xff] }
   0x5   :  { %647 = vmatpush3.msra.mxu0 %v765_v3  ;;  %v798_v18 = vand.u32 4294901760, %v31_v16  ;;  %v800_v19 = vand.u32 4294901760, %v34_v17  ;;  %v163_v20 = vsub.f32 %v19_v2, %v769_v5  ;;  %v170_v21 = vsub.f32 %v18_v6, %v780_v9 }
   0x6   :  { %648 = vmatprep.subr.mxu0 %v767_v4  ;;  %v805_v22 = vand.u32 4294901760, %v149_v14  ;;  %v807_v23 = vand.u32 4294901760, %v156_v15  ;;  %v177_v24 = vsub.f32 %v17_v7, %v782_v10  ;;  %v811_v25 = vsub.f32 %v16_v8, %v784_v11 }
   0x7   :  { %649 = vmatpush3.msra.mxu0 %v767_v4  ;;  %v815_v26 = vsub.f32 %v31_v16, %v798_v18  ;;  %v817_v27 = vand.u32 4294901760, %v163_v20  ;;  %v820_v28 = vsub.f32 %v34_v17, %v800_v19  ;;  %v822_v29 = vand.u32 4294901760, %v170_v21  ;;  %673 = vmatprep.mubr.f32.mxu1 %v798_v18 }
   0x8   :  { %650 = vmatprep.subr.mxu0 %v769_v5  ;;  %v151_v30 = vsub.f32 %v149_v14, %v805_v22  ;;  %v158_v31 = vsub.f32 %v156_v15, %v807_v23  ;;  %v832_v35 = vand.u32 4294901760, %v177_v24  ;;  %v844_v41 = vand.u32 4294901760, %v811_v25 }
   0x9   :  { %651 = vmatpush3.msra.mxu0 %v769_v5  ;;  %v109_v32 = vand.u32 4294901760, %v815_v26  ;;  %v165_v33 = vsub.f32 %v163_v20, %v817_v27  ;;  %v119_v34 = vand.u32 4294901760, %v820_v28  ;;  %v172_v40 = vsub.f32 %v170_v21, %v822_v29 }
   0xa   :  { %652 = vmatprep.subr.mxu0 %v780_v9  ;;  %v152_v36 = vand.u32 4294901760, %v151_v30  ;;  %v159_v37 = vand.u32 4294901760, %v158_v31  ;;  %v179_v45 = vsub.f32 %v177_v24, %v832_v35  ;;  %v186_v47 = vsub.f32 %v811_v25, %v844_v41 }
   0xb   :  { %653 = vmatpush3.msra.mxu0 %v780_v9  ;;  %v110_v38 = vsub.f32 %v815_v26, %v109_v32  ;;  %v120_v39 = vsub.f32 %v820_v28, %v119_v34  ;;  %v166_v42 = vand.u32 4294901760, %v165_v33  ;;  %v173_v46 = vand.u32 4294901760, %v172_v40 }
   0xc   :  { %654 = vmatprep.subr.mxu0 %v782_v10  ;;  %661 = vmatprep.subr.mxu1 %v152_v36  ;;  %v180_v48 = vand.u32 4294901760, %v179_v45  ;;  %v187_v49 = vand.u32 4294901760, %v186_v47 }
   0xd   :  { %655 = vmatpush3.msra.mxu0 %v782_v10  ;;  %662 = vmatpush3.msra.mxu1 %v152_v36  ;;  %v111_v43 = vand.u32 4294901760, %v110_v38  ;;  %v121_v44 = vand.u32 4294901760, %v120_v39 }
   0xe   :  { %656 = vmatprep.subr.mxu0 %v784_v11  ;;  %663 = vmatprep.subr.mxu1 %v159_v37 }
   0xf   :  { %657 = vmatpush3.msra.mxu0 %v784_v11  ;;  %664 = vmatpush3.msra.mxu1 %v159_v37 }
  0x10   :  { %658 = vmatprep.mubr.f32.mxu0 %v111_v43  ;;  %665 = vmatprep.subr.mxu1 %v166_v42 }
  0x11   :  { %676 = vmatprep.subr.mxu0 %v149_v14  ;;  %659 = vmatmul.mubr.f32.vlgmr.msra.gmra.mxu0 %v121_v44 }
  0x12   :  { %666 = vmatpush3.msra.mxu1 %v166_v42  ;;  %677 = vmatpush3.msra.mxu0 %v149_v14 }
  0x13   :  { %667 = vmatprep.subr.mxu1 %v173_v46  ;;  %678 = vmatprep.subr.mxu0 %v156_v15 }
  0x14   :  { %668 = vmatpush3.msra.mxu1 %v173_v46  ;;  %679 = vmatpush3.msra.mxu0 %v156_v15 }
  0x15   :  { %669 = vmatprep.subr.mxu1 %v180_v48  ;;  %680 = vmatprep.subr.mxu0 %v163_v20 }
  0x16   :  { %670 = vmatpush3.msra.mxu1 %v180_v48  ;;  %681 = vmatpush3.msra.mxu0 %v163_v20 }
  0x17   :  { %671 = vmatprep.subr.mxu1 %v187_v49  ;;  %682 = vmatprep.subr.mxu0 %v170_v21 }
  0x18   :  { %672 = vmatpush3.msra.mxu1 %v187_v49  ;;  %683 = vmatpush3.msra.mxu0 %v170_v21 }
  0x19   :  { %674 = vmatmul.mubr.f32.vlgmr.msra.gmra.mxu1 %v800_v19  ;;  %684 = vmatprep.subr.mxu0 %v177_v24 }
  0x1a   :  { %691 = vmatprep.subr.mxu1 %v765_v3  ;;  %685 = vmatpush3.msra.mxu0 %v177_v24 }
  0x1b   :  { %692 = vmatpush3.msra.mxu1 %v765_v3  ;;  %686 = vmatprep.subr.mxu0 %v811_v25 }
  0x1c   :  { %693 = vmatprep.subr.mxu1 %v767_v4  ;;  %687 = vmatpush3.msra.mxu0 %v811_v25 }
  0x1d   :  { %688 = vmatprep.mubr.f32.mxu0 %v815_v26  ;;  %694 = vmatpush3.msra.mxu1 %v767_v4 }
  0x1e   :  { %689 = vmatmul.mubr.f32.vlgmr.msra.gmra.mxu0 %v820_v28  ;;  %695 = vmatprep.subr.mxu1 %v769_v5 }
  0x1f   :  { %706 = vmatprep.subr.mxu0 %v805_v22  ;;  %696 = vmatpush3.msra.mxu1 %v769_v5 }
  0x20   :  { %707 = vmatpush3.msra.mxu0 %v805_v22  ;;  %697 = vmatprep.subr.mxu1 %v780_v9 }
  0x21   :  { %708 = vmatprep.subr.mxu0 %v807_v23  ;;  %698 = vmatpush3.msra.mxu1 %v780_v9 }
  0x22   :  { %709 = vmatpush3.msra.mxu0 %v807_v23  ;;  %699 = vmatprep.subr.mxu1 %v782_v10 }
  0x23   :  { %710 = vmatprep.subr.mxu0 %v817_v27  ;;  %700 = vmatpush3.msra.mxu1 %v782_v10 }
  0x24   :  { %711 = vmatpush3.msra.mxu0 %v817_v27  ;;  %701 = vmatprep.subr.mxu1 %v784_v11 }
  0x25   :  { %712 = vmatprep.subr.mxu0 %v822_v29  ;;  %702 = vmatpush3.msra.mxu1 %v784_v11 }
  0x26   :  { %703 = vmatprep.mubr.f32.mxu1 %v109_v32  ;;  %713 = vmatpush3.msra.mxu0 %v822_v29 }
  0x27   :  { %704 = vmatmul.mubr.f32.vlgmr.msra.gmra.mxu1 %v119_v34  ;;  %714 = vmatprep.subr.mxu0 %v832_v35 }
  0x28   :  { %721 = vmatprep.subr.mxu1 %v765_v3  ;;  %715 = vmatpush3.msra.mxu0 %v832_v35 }
  0x29   :  { %722 = vmatpush3.msra.mxu1 %v765_v3  ;;  %716 = vmatprep.subr.mxu0 %v844_v41 }
  0x2a   :  { %723 = vmatprep.subr.mxu1 %v767_v4  ;;  %717 = vmatpush3.msra.mxu0 %v844_v41 }
  0x2b   :  { %718 = vmatprep.mubr.f32.mxu0 %v798_v18  ;;  %724 = vmatpush3.msra.mxu1 %v767_v4 }
  0x2c   :  { %719 = vmatmul.mubr.f32.vlgmr.msra.gmra.mxu0 %v800_v19  ;;  %725 = vmatprep.subr.mxu1 %v769_v5 }
  0x2d   :  { %726 = vmatpush3.msra.mxu1 %v769_v5  ;;  %733 = vmatprep.mubr.f32.mxu1 %v798_v18 }
  0x2e   :  { %727 = vmatprep.subr.mxu1 %v780_v9 }
  0x2f   :  { %728 = vmatpush3.msra.mxu1 %v780_v9 }
  0x30   :  { %729 = vmatprep.subr.mxu1 %v782_v10 }
  0x31   :  { %730 = vmatpush3.msra.mxu1 %v782_v10 }
  0x32   :  { %731 = vmatprep.subr.mxu1 %v784_v11 }
  0x33   :  { %732 = vmatpush3.msra.mxu1 %v784_v11 }
  0x34   :  { %734 = vmatmul.mubr.f32.vlgmr.msra.gmra.mxu1 %v800_v19 }
  0xd1   :  { %v660_v50 = vpop.f32.mrf.mxu0 }
  0xd2   :  { %v124_v54 = vadd.f32 %v660_v50, %v597_v51 }
  0xd3   :  { %v113_v52 = vpop.f32.mrf.mxu0 }
  0xd4   :  { %v114_v57 = vadd.f32 %v597_v51, %v113_v52 }
  0xd9   :  { %v675_v53 = vpop.f32.mrf.mxu1 }
  0xda   :  { %v231_v58 = vadd.f32 %v675_v53, %v124_v54 }
  0xdb   :  { %v224_v56 = vpop.f32.mrf.mxu1 }
  0xdc   :  { %v225_v62 = vadd.f32 %v224_v56, %v114_v57 }
  0xde   :  { %v690_v55 = vpop.f32.mrf.mxu0 }
  0xdf   :  { %v322_v63 = vadd.f32 %v690_v55, %v231_v58 }
  0xe0   :  { %v314_v59 = vpop.f32.mrf.mxu0 }
  0xe1   :  { %v315_v1 = vadd.f32 %v314_v59, %v225_v62 }
  0xe7   :  { %v705_v60 = vpop.f32.mrf.mxu1 }
  0xe8   :  { %v409_v2 = vadd.f32 %v705_v60, %v322_v63 }
  0xe9   :  { %v400_v0 = vpop.f32.mrf.mxu1 }
  0xea   :  { %v401_v4 = vadd.f32 %v400_v0, %v315_v1 }
  0xec   :  { %v720_v61 = vpop.f32.mrf.mxu0 }
  0xed   :  { %v504_v5 = vadd.f32 %v720_v61, %v409_v2 }
  0xee   :  { %v497_v3 = vpop.f32.mrf.mxu0 }
  0xef   :  { %v498_v7 = vadd.f32 %v497_v3, %v401_v4 }
  0xf4   :  { %v735_v6 = vpop.f32.mrf.mxu1 }
  0xf5   :  { %v587_v8 = vadd.f32 %v735_v6, %v504_v5 }
  0xf6   :  { %v580_v9 = vpop.f32.mrf.mxu1 }
  0xf7   :  { %592 = vst.msk [vmem:[%s914_s3 + $0x8] sm:$0xff] %vm590_vm1, %v587_v8  ;;  %v581_v10 = vadd.f32 %v580_v9, %v498_v7 }
  0xf9   :  { %591 = vst.msk [vmem:[%s914_s3] sm:$0xff] %vm590_vm1, %v581_v10 }

</bundles_post_ra>
